<compile_context>
chip_gen: v5e
topology: v5e:2x2
jax: 0.10.0
libtpu: 0.0.40
codegen_flags: <defaults>
</compile_context>

<pallas_src>
import numpy as np
import jax
import jax.numpy as jnp
from jax.experimental import pallas as pl
from jax.experimental.pallas import tpu as pltpu


# ----------------------------- parameter setup (deterministic) ---------------

def _hz_to_mel(f):
    return 2595.0 * np.log10(1.0 + f / 700.0)


def _mel_to_hz(m):
    return 700.0 * (10.0 ** (m / 2595.0) - 1.0)


def melscale_fbanks(n_freqs, f_min, f_max, n_mels, sample_rate):
    """torchaudio.functional.melscale_fbanks (htk scale, norm=None)."""
    all_freqs = np.linspace(0.0, sample_rate / 2.0, n_freqs)
    m_min, m_max = _hz_to_mel(f_min), _hz_to_mel(f_max)
    m_pts = np.linspace(m_min, m_max, n_mels + 2)
    f_pts = _mel_to_hz(m_pts)
    f_diff = f_pts[1:] - f_pts[:-1]                          # (n_mels+1,)
    slopes = f_pts[None, :] - all_freqs[:, None]             # (n_freqs, n_mels+2)
    down = -slopes[:, :-2] / f_diff[:-1]
    up = slopes[:, 2:] / f_diff[1:]
    fb = np.maximum(0.0, np.minimum(down, up))               # (n_freqs, n_mels)
    return fb.astype(np.float32)


def hann_window(win_length):
    n = np.arange(win_length)
    return (0.5 - 0.5 * np.cos(2.0 * np.pi * n / win_length)).astype(np.float32)


def dft_matrices(n_fft):
    """Real/imag DFT basis for one-sided spectrum: (n_fft, n_fft//2+1)."""
    n_freq = n_fft // 2 + 1
    n = np.arange(n_fft)[:, None]
    k = np.arange(n_freq)[None, :]
    ang = 2.0 * np.pi * n * k / n_fft
    return np.cos(ang).astype(np.float32), np.sin(ang).astype(np.float32)


def _round_up(x, m):
    return (x + m - 1) // m * m


# ----------------------------- Pallas kernel ---------------------------------

def _make_kernel(t_real, t_pad, n_chunks_per_frame, hop, pf):
    """chunks (b,C,hop) -> mean-subtracted log-mels (b,Tp,Pm), lane-dense."""
    inv_t = np.float32(1.0 / t_real)

    def kernel(chunks_ref, dftw_ref, fb_ref, out_ref):
        b_tile = chunks_ref.shape[0]
        m = b_tile * t_pad
        # STFT via the hop-band decomposition of the windowed DFT:
        #   frame[t] = concat_j chunks[t + j]   (j = 0..R-1)
        #   STFT[t]  = sum_j chunks[t + j] @ dftw[j*hop:(j+1)*hop]
        # The overlapped frame matrix never exists in HBM; only hop-sized VMEM
        # slabs are touched here.  (Tp % 8 == 0 makes the reshapes tile-aligned.)
        ri = None
        for j in range(n_chunks_per_frame):
            cj = chunks_ref[:, j:j + t_pad, :].reshape(m, hop)
            wj = dftw_ref[j * hop:(j + 1) * hop, :]
            part = jnp.dot(cj, wj, preferred_element_type=jnp.float32,
                           precision=jax.lax.Precision.HIGHEST)
            ri = part if ri is None else ri + part                     # (m, 2*Pf)
        re, im = ri[:, :pf], ri[:, pf:]                                # 128-aligned split
        power = re * re + im * im                                      # (m, Pf)
        # Mel filterbank matmul in bf16 (weights in [0,1]) with f32 accumulation.
        mel = jnp.dot(power.astype(jnp.bfloat16), fb_ref[...],
                      preferred_element_type=jnp.float32)              # (m, Pm)
        logmel = jnp.log(mel + 1e-6).reshape(b_tile, t_pad, -1)
        # Per-(batch, mel) mean over the REAL time rows only (padded rows masked,
        # divisor is the real T) -- matches out - out.mean(axis=2) exactly.
        row = jax.lax.broadcasted_iota(jnp.int32, (1, t_pad, 1), 1)
        valid = (row < t_real).astype(jnp.float32)
        mean = jnp.sum(logmel * valid, axis=1, keepdims=True) * inv_t
        out_ref[...] = logmel - mean

    return kernel


# ----------------------------- tiling / VMEM heuristics -----------------------

def _tpu_vmem_and_tc():
    """(vmem_capacity_bytes, multi_tensorcore) with safe fallbacks."""
    vmem = None
    try:
        vmem = int(pltpu.get_tpu_info().vmem_capacity_bytes)
    except Exception:
        vmem = None
    kind = ""
    try:
        kind = jax.devices()[0].device_kind.lower()
    except Exception:
        kind = ""
    multi_tc = "v7" in kind                      # v7x: 2 TensorCores / chip
    if vmem is None:
        # Unknown -> assume the smallest (v7x: 64 MiB per TC); v5e/v6e: 128 MiB.
        vmem = 64 * 2 ** 20 if (multi_tc or not kind) else 128 * 2 ** 20
    return vmem, multi_tc


def _step_vmem_bytes(b_tile, t_pad, n_chunks, hop, n_fft, pf, pm, const_bufs):
    rows = b_tile * t_pad
    hop_l = _round_up(hop, 128)                  # lane padding of chunk buffer
    c_s = _round_up(n_chunks, 8)
    io = 4 * (2 * b_tile * c_s * hop_l           # chunks block (double-buffered)
              + 2 * b_tile * t_pad * pm)         # output block (double-buffered)
    interm = 4 * rows * (3 * pf + hop_l + 2 * pm)   # ri, power, slice temp, mel/logmel
    consts = const_bufs * (4 * n_fft * 2 * pf + 2 * pf * pm)  # dftw f32, fb bf16
    return io + interm + consts


def _choose_b_tile(B, t_pad, n_chunks, hop, n_fft, pf, pm, budget, multi_tc,
                   const_bufs, target_rows=256):
    divisors = [d for d in range(1, B + 1) if B % d == 0]
    fits = [d for d in divisors
            if _step_vmem_bytes(d, t_pad, n_chunks, hop, n_fft, pf, pm,
                                const_bufs) <= budget]
    if not fits:
        # TODO(synk): T-tiling fallback ("arbitrary" time axis + masked mean
        # accumulator with a second pass for the subtraction) for utterances so
        # long that even b_tile=1 exceeds the per-step budget.
        fits = [1]
    if multi_tc:
        # Keep >= 2 "parallel" steps (two TensorCores) only if each step still
        # fills the MXU M dimension; otherwise one fat step is strictly better.
        both = [d for d in fits if B // d >= 2 and d * t_pad >= target_rows]
        if both:
            return max(both)
    # Single TC (v5e/v6e) or tiny problem: fewest, fattest steps.
    return max(fits)


# ----------------------------- wrapper ----------------------------------------

def log_fbank_cal(x, sample_rate, n_fft, win_length, hop_length, n_mels):
    """x: (B, num_samples) float32 -> (B, n_mels, T) float32."""
    B, num_samples = x.shape
    assert win_length <= n_fft
    # TODO(synk): hop_length that does not divide n_fft needs a gather-style
    # framing path (not implemented); standard configs satisfy this.
    assert n_fft % hop_length == 0, "in-kernel framing requires hop_length | n_fft"
    R = n_fft // hop_length                      # hop-chunks per frame
    n_freq = n_fft // 2 + 1

    # DC and Nyquist bins have exactly-zero mel weights (f_min=0, f_max=sr/2),
    # so only bins 1 .. n_fft/2-1 are kept -> smaller lane-padded freq dim.
    n_used = n_fft // 2 - 1
    pf = _round_up(max(n_used, 1), 128)          # padded freq bins (lanes)
    pm = _round_up(n_mels, 128)                  # padded mel channels (lanes)

    # Frame count (torch.stft, center=True) and its sublane-padded version.
    T = num_samples // hop_length + 1
    Tp = _round_up(T, 8)
    C = Tp + R - 1                               # hop-chunks needed per utterance

    # Reflect-pad (torch.stft center=True), pad/trim to exactly C*hop samples and
    # reshape (free, contiguous) into non-overlapping chunks.  Only the raw
    # waveform crosses HBM: no n_fft/hop frame inflation, no gather round trip.
    pad = n_fft // 2
    xp = jnp.pad(x.astype(jnp.float32), ((0, 0), (pad, pad)), mode="reflect")
    need = C * hop_length
    if need > xp.shape[1]:
        xp = jnp.pad(xp, ((0, 0), (0, need - xp.shape[1])))
    elif need < xp.shape[1]:
        xp = xp[:, :need]                        # real frames never read past `need`
    chunks = xp.reshape(B, C, hop_length)

    # Windowed DFT basis (Hann folded in; zero-padded/centered window if
    # win_length < n_fft, as torch.stft does), [cos | sin] fused lane-dense.
    win = np.zeros(n_fft, np.float32)
    lpad = (n_fft - win_length) // 2
    win[lpad:lpad + win_length] = hann_window(win_length)
    cos_m, sin_m = dft_matrices(n_fft)
    dftw = np.zeros((n_fft, 2 * pf), np.float32)
    dftw[:, :n_used] = win[:, None] * cos_m[:, 1:1 + n_used]
    dftw[:, pf:pf + n_used] = win[:, None] * sin_m[:, 1:1 + n_used]
    fb_full = melscale_fbanks(n_freq, 0.0, sample_rate / 2.0, n_mels, sample_rate)
    fb = np.zeros((pf, pm), np.float32)
    fb[:n_used, :n_mels] = fb_full[1:1 + n_used, :]

    # Generation-aware VMEM budgeting and batch-tile choice.
    vmem_cap, multi_tc = _tpu_vmem_and_tc()
    vmem_limit = max(32 * 2 ** 20, min(int(0.75 * vmem_cap), 96 * 2 ** 20))
    budget = int(0.75 * vmem_limit)
    const_bytes = dftw.nbytes + fb.size * 2      # fb is shipped as bf16
    const_bufs = 1 if const_bytes >= 2 * 2 ** 20 else 2
    b_tile = _choose_b_tile(B, Tp, C, hop_length, n_fft, pf, pm, budget,
                            multi_tc, const_bufs)
    grid = (B // b_tile,)

    # Constant tables: same block every step.  Single-buffer them only when they
    # are large enough for the VMEM saving to matter (frees room for a larger
    # b_tile on v7x); negligible at small n_fft.
    if const_bufs == 1:
        dftw_spec = pl.BlockSpec((n_fft, 2 * pf), lambda b: (0, 0),
                                 pipeline_mode=pl.Buffered(1))
        fb_spec = pl.BlockSpec((pf, pm), lambda b: (0, 0),
                               pipeline_mode=pl.Buffered(1))
    else:
        dftw_spec = pl.BlockSpec((n_fft, 2 * pf), lambda b: (0, 0))
        fb_spec = pl.BlockSpec((pf, pm), lambda b: (0, 0))

    cost = pl.CostEstimate(
        flops=int(2.0 * B * Tp * n_fft * 2 * pf + 2.0 * B * Tp * pf * pm
                  + 3.0 * B * Tp * pf),
        transcendentals=int(B * Tp * pm),
        bytes_accessed=int(4 * B * C * hop_length + dftw.nbytes + fb.size * 2
                           + 4 * B * Tp * pm))

    out = pl.pallas_call(
        _make_kernel(T, Tp, R, hop_length, pf),
        out_shape=jax.ShapeDtypeStruct((B, Tp, pm), jnp.float32),
        grid=grid,
        in_specs=[
            pl.BlockSpec((b_tile, C, hop_length), lambda b: (b, 0, 0)),
            dftw_spec,
            fb_spec,
        ],
        out_specs=pl.BlockSpec((b_tile, Tp, pm), lambda b: (b, 0, 0)),
        compiler_params=pltpu.CompilerParams(
            dimension_semantics=("parallel",),
            vmem_limit_bytes=int(vmem_limit)),
        cost_estimate=cost,
    )(chunks, jnp.asarray(dftw), jnp.asarray(fb, dtype=jnp.bfloat16))

    # Lane-dense kernel layout (B, Tp, Pm) -> PyTorch layout (B, n_mels, T):
    # cheap XLA slice + transpose on a small tensor (skip it if the consumer can
    # take (B, T, n_mels) directly).
    result = jnp.transpose(out[:, :T, :n_mels], (0, 2, 1))
    # TODO(synk): is_aug spec-augment branch uses Python `random` in-place row
    # masking; not implemented (default is_aug=[] path reproduced exactly).
    return result


# ----------------------------- main -------------------------------------------

if __name__ == "__main__":
    sample_rate = 16000
    n_fft = 64
    win_length = 64
    hop_length = 32
    n_mels = 16
    batch = 2
    num_samples = 256

    key = jax.random.PRNGKey(0)
    x = jax.random.normal(key, (batch, num_samples), dtype=jnp.float32)

    out = log_fbank_cal(x, sample_rate, n_fft, win_length, hop_length, n_mels)
    out = jax.block_until_ready(out)
    assert out.shape == (batch, n_mels, num_samples // hop_length + 1)
    assert out.dtype == jnp.float32
    print("KERNEL_OK")
</pallas_src>

<mosaic_0001>
module attributes {stable_mosaic.version = 11 : i64} {
  func.func @kernel(%arg0: i32, %arg1: memref<2x17x32xf32, #tpu.memory_space<vmem>>, %arg2: memref<64x256xf32, #tpu.memory_space<vmem>>, %arg3: memref<128x128xbf16, #tpu.memory_space<vmem>>, %arg4: memref<2x16x128xf32, #tpu.memory_space<vmem>>) attributes {dimension_semantics = [#tpu.dimension_semantics<parallel>], iteration_bounds = array<i64: 1>, scalar_prefetch = 0 : i64, scratch_operands = 0 : i64, tpu.core_type = #tpu.core_type<tc>, window_params = [{transform_indices = @transform_0, window_bounds = array<i64: 2, 17, 32>}, {pipeline_mode = #tpu.pipeline_mode<synchronous>, transform_indices = @transform_1, window_bounds = array<i64: 64, 256>}, {pipeline_mode = #tpu.pipeline_mode<synchronous>, transform_indices = @transform_2, window_bounds = array<i64: 128, 128>}, {transform_indices = @transform_3, window_bounds = array<i64: 2, 16, 128>}]} {
    %c0 = arith.constant 0 : index
    %c0_0 = arith.constant 0 : index
    %c0_1 = arith.constant 0 : index
    %0 = vector.load %arg1[%c0, %c0_0, %c0_1] : memref<2x17x32xf32, #tpu.memory_space<vmem>>, vector<2x16x32xf32>
    %1 = vector.shape_cast %0 : vector<2x16x32xf32> to vector<32x32xf32>
    %c0_2 = arith.constant 0 : index
    %c0_3 = arith.constant 0 : index
    %2 = vector.load %arg2[%c0_2, %c0_3] : memref<64x256xf32, #tpu.memory_space<vmem>>, vector<32x256xf32>
    %cst = arith.constant dense<0.000000e+00> : vector<32x256xf32>
    %3 = tpu.matmul %1, %2, %cst {dimension_numbers = #tpu.dot_dimension_numbers<[1], [0], [0], [1], [0, 0, 1, 1], [], []>, precision = #tpu.contract_precision<fp32>} : vector<32x32xf32>, vector<32x256xf32>, vector<32x256xf32> -> vector<32x256xf32>
    %c0_4 = arith.constant 0 : index
    %c1 = arith.constant 1 : index
    %c0_5 = arith.constant 0 : index
    %4 = vector.load %arg1[%c0_4, %c1, %c0_5] : memref<2x17x32xf32, #tpu.memory_space<vmem>>, vector<2x16x32xf32>
    %5 = vector.shape_cast %4 : vector<2x16x32xf32> to vector<32x32xf32>
    %c32 = arith.constant 32 : index
    %c0_6 = arith.constant 0 : index
    %6 = vector.load %arg2[%c32, %c0_6] : memref<64x256xf32, #tpu.memory_space<vmem>>, vector<32x256xf32>
    %cst_7 = arith.constant dense<0.000000e+00> : vector<32x256xf32>
    %7 = tpu.matmul %5, %6, %cst_7 {dimension_numbers = #tpu.dot_dimension_numbers<[1], [0], [0], [1], [0, 0, 1, 1], [], []>, precision = #tpu.contract_precision<fp32>} : vector<32x32xf32>, vector<32x256xf32>, vector<32x256xf32> -> vector<32x256xf32>
    %8 = arith.addf %3, %7 : vector<32x256xf32>
    %9 = vector.extract_strided_slice %8 {offsets = [0, 0], sizes = [32, 128], strides = [1, 1]} : vector<32x256xf32> to vector<32x128xf32>
    %10 = vector.extract_strided_slice %8 {offsets = [0, 128], sizes = [32, 128], strides = [1, 1]} : vector<32x256xf32> to vector<32x128xf32>
    %11 = arith.mulf %9, %9 : vector<32x128xf32>
    %12 = arith.mulf %10, %10 : vector<32x128xf32>
    %13 = arith.addf %11, %12 : vector<32x128xf32>
    %14 = arith.truncf %13 : vector<32x128xf32> to vector<32x128xbf16>
    %c0_8 = arith.constant 0 : index
    %c0_9 = arith.constant 0 : index
    %15 = vector.load %arg3[%c0_8, %c0_9] : memref<128x128xbf16, #tpu.memory_space<vmem>>, vector<128x128xbf16>
    %cst_10 = arith.constant dense<0.000000e+00> : vector<32x128xf32>
    %16 = tpu.matmul %14, %15, %cst_10 {dimension_numbers = #tpu.dot_dimension_numbers<[1], [0], [0], [1], [0, 0, 1, 1], [], []>} : vector<32x128xbf16>, vector<128x128xbf16>, vector<32x128xf32> -> vector<32x128xf32>
    %cst_11 = arith.constant 9.99999997E-7 : f32
    %17 = vector.broadcast %cst_11 : f32 to vector<32x128xf32>
    %18 = arith.addf %16, %17 : vector<32x128xf32>
    %19 = math.log %18 : vector<32x128xf32>
    %20 = vector.shape_cast %19 : vector<32x128xf32> to vector<2x16x128xf32>
    %21 = tpu.iota {dimensions = array<i32: 1>} : vector<1x16x1xi32>
    %c9_i32 = arith.constant 9 : i32
    %22 = vector.broadcast %c9_i32 : i32 to vector<1x16x1xi32>
    %23 = arith.cmpi slt, %21, %22 : vector<1x16x1xi32>
    %24 = arith.extui %23 : vector<1x16x1xi1> to vector<1x16x1xi32>
    %25 = arith.sitofp %24 : vector<1x16x1xi32> to vector<1x16x1xf32>
    %26 = vector.broadcast %25 : vector<1x16x1xf32> to vector<2x16x128xf32>
    %27 = arith.mulf %20, %26 : vector<2x16x128xf32>
    %cst_12 = arith.constant dense<0.000000e+00> : vector<2x128xf32>
    %28 = vector.multi_reduction <add>, %27, %cst_12 [1] : vector<2x16x128xf32> to vector<2x128xf32>
    %29 = vector.shape_cast %28 : vector<2x128xf32> to vector<2x1x128xf32>
    %cst_13 = arith.constant 0.111111112 : f32
    %30 = vector.broadcast %cst_13 : f32 to vector<2x1x128xf32>
    %31 = arith.mulf %29, %30 : vector<2x1x128xf32>
    %32 = vector.broadcast %31 : vector<2x1x128xf32> to vector<2x16x128xf32>
    %33 = arith.subf %20, %32 : vector<2x16x128xf32>
    %c0_14 = arith.constant 0 : index
    %c0_15 = arith.constant 0 : index
    %c0_16 = arith.constant 0 : index
    %34 = vector.load %arg4[%c0_14, %c0_15, %c0_16] : memref<2x16x128xf32, #tpu.memory_space<vmem>>, vector<2x16x128xf32>
    tpu.vector_store %arg4[%c0_14, %c0_15, %c0_16], %33 {strides = array<i32>} : memref<2x16x128xf32, #tpu.memory_space<vmem>>, vector<2x16x128xf32>,
    return
  }
  func.func @transform_0(%arg0: i32) -> (i32, i32, i32) {
    %c0_i32 = arith.constant 0 : i32
    %c0_i32_0 = arith.constant 0 : i32
    %c0_i32_1 = arith.constant 0 : i32
    return %arg0, %c0_i32, %c0_i32_0 : i32, i32, i32
  }
  func.func @transform_1(%arg0: i32) -> (i32, i32) {
    %c0_i32 = arith.constant 0 : i32
    %c0_i32_0 = arith.constant 0 : i32
    %c0_i32_1 = arith.constant 0 : i32
    return %c0_i32, %c0_i32_0 : i32, i32
  }
  func.func @transform_2(%arg0: i32) -> (i32, i32) {
    %c0_i32 = arith.constant 0 : i32
    %c0_i32_0 = arith.constant 0 : i32
    %c0_i32_1 = arith.constant 0 : i32
    return %c0_i32, %c0_i32_0 : i32, i32
  }
  func.func @transform_3(%arg0: i32) -> (i32, i32, i32) {
    %c0_i32 = arith.constant 0 : i32
    %c0_i32_0 = arith.constant 0 : i32
    %c0_i32_1 = arith.constant 0 : i32
    return %arg0, %c0_i32, %c0_i32_0 : i32, i32, i32
  }
}

</mosaic_0001>

<bundles_post_ra>
// kernel: tpu_custom_call.1
= control target key start
LH: loop header
LB: loop body
LE: loop exit
PB: predicated region body
PF: predicated region fallthrough
CT: control target
= control target key end

     0   :  { %8 = vsyncpa [#allocation3], 0  ;;  %s1900_s0 = inlined_call_operand.vmem [shape: f32[2,17,32], index: 0, kind: input, shape index: {}]   ;;  %s1901_s1 = inlined_call_operand.hbm [shape: f32[64,256], index: 1, kind: input, shape index: {}]   ;;  %s1902_s2 = inlined_call_operand.vmem [shape: bf16[128,128], index: 2, kind: input, shape index: {}]   ;;  %s1903_s3 = inlined_call_operand.hbm [shape: f32[2,16,128], index: 3, kind: output, shape index: {}]  }
   0x1   :  { %9 = vsyncpa [#allocation4], 0  ;;  %s16_s14 = sshll.u32 %s1901_s1, 4  ;;  %s1477_s15 = smov [#allocation2]   ;;  %s17_s14 = int_to_ptr.hbm [resolvable:$true] %s16_s14 }
   0x2   :  { %s18_s16 = sshll.u32 %s1477_s15, 4  ;;  %s1478_s17 = smov 256   ;;  %s19_s16 = int_to_ptr.vmem [resolvable:$true] %s18_s16 }
   0x3   :  { %s1479_s18 = smov 16  }
   0x4   :  { %24 = dma.hbm_to_vmem [thread:$0]  %s17_s14, 2048, %s19_s16, [#allocation3], %s1478_s17, %s1478_s17, %s1479_s18  }
   0x5   :  { %1473 = dma.done.wait [#allocation3], 2048  }
   0x6   :  { %1474 = vsyncadd [#allocation3], 4294965248  ;;  %vm55_vm0 = vcmask 261120   ;;  %v53_v0 = vld [vmem:[#allocation2 + $0x70] sm:$0xff]  ;;  %v51_v1 = vld [vmem:[#allocation2 + $0x60] sm:$0xff]  ;;  %s1340_s24 = sshll.u32 %s1903_s3, 4  ;;  %s1341_s24 = int_to_ptr.hbm [resolvable:$true] %s1340_s24 }
   0x7   :  { %v49_v2 = vld [vmem:[#allocation2 + $0x50] sm:$0xff]  ;;  %v1507_v3 = vand.u32 4294901760, %v53_v0  ;;  %v1509_v4 = vand.u32 4294901760, %v51_v1  ;;  %v47_v6 = vld [vmem:[#allocation2 + $0x40] sm:$0xff]  ;;  %v54_v24 = vld [vmem:[#allocation2 + $0x78] sm:$0xff]  ;;  %s1482_s25 = smov 128  }
   0x8   :  { %v1511_v5 = vand.u32 4294901760, %v49_v2  ;;  %v43_v7 = vld [vmem:[%s1900_s0 + $0x1] sm:$0xff]  ;;  %v1519_v9 = vand.u32 4294901760, %v47_v6  ;;  %v44_v12 = vld [vmem:[%s1900_s0 + $0x9] sm:$0xff]  ;;  %v1561_v34 = vand.u32 4294901760, %v54_v24  ;;  %v45_v35 = vld [vmem:[%s1900_s0 + $0x19] sm:$0xff] }
   0x9   :  { %v46_v8 = vld [vmem:[%s1900_s0 + $0x21] sm:$0xff]  ;;  %v57_v10 = vsel %vm55_vm0, %v43_v7, 0  ;;  %81 = vmatpush.msra.mxu0 %v1507_v3  ;;  %1394 = vmatpush.msra.mxu2 %v1507_v3  ;;  %v134_v13 = vsub.f32 %v53_v0, %v1507_v3  ;;  %v140_v16 = vsub.f32 %v51_v1, %v1509_v4  ;;  %v60_v19 = vsel %vm55_vm0, %v44_v12, 0  ;;  %v50_v40 = vld [vmem:[#allocation2 + $0x58] sm:$0xff]  ;;  %s1483_s26 = smov 8  }
   0xa   :  { %v66_v11 = vsel %vm55_vm0, %v46_v8, 0  ;;  %v1529_v14 = vand.u32 4294901760, %v57_v10  ;;  %v146_v17 = vsub.f32 %v49_v2, %v1511_v5  ;;  %v1536_v18 = vsub.f32 %v47_v6, %v1519_v9  ;;  %v52_v36 = vld [vmem:[#allocation2 + $0x68] sm:$0xff] }
   0xb   :  { %v1531_v15 = vand.u32 4294901760, %v66_v11  ;;  %83 = vmatpush.msra.mxu0 %v1509_v4  ;;  %1395 = vmatpush.msra.mxu2 %v1509_v4  ;;  %v135_v20 = vand.u32 4294901760, %v134_v13  ;;  %v141_v23 = vand.u32 4294901760, %v140_v16  ;;  %v1548_v27 = vand.u32 4294901760, %v60_v19  ;;  %v48_v53 = vld [vmem:[#allocation2 + $0x48] sm:$0xff] }
   0xc   :  { %v1542_v21 = vsub.f32 %v57_v10, %v1529_v14  ;;  %v147_v25 = vand.u32 4294901760, %v146_v17  ;;  %v153_v26 = vand.u32 4294901760, %v1536_v18  ;;  %v63_v46 = vsel %vm55_vm0, %v45_v35, 0 }
   0xd   :  { %v1545_v22 = vsub.f32 %v66_v11, %v1531_v15  ;;  %85 = vmatpush.msra.mxu0 %v1511_v5  ;;  %1396 = vmatpush.msra.mxu2 %v1511_v5  ;;  %v136_v28 = vsub.f32 %v134_v13, %v135_v20  ;;  %v142_v31 = vsub.f32 %v140_v16, %v141_v23  ;;  %v1581_v47 = vand.u32 4294901760, %v52_v36 }
   0xe   :  { %v1553_v29 = vand.u32 4294901760, %v1542_v21  ;;  %v148_v32 = vsub.f32 %v146_v17, %v147_v25  ;;  %v1559_v33 = vsub.f32 %v60_v19, %v1548_v27  ;;  %v154_v42 = vsub.f32 %v1536_v18, %v153_v26 }
   0xf   :  { %v1556_v30 = vand.u32 4294901760, %v1545_v22  ;;  %87 = vmatpush.msra.mxu0 %v1519_v9  ;;  %1397 = vmatpush.msra.mxu2 %v1519_v9  ;;  %v137_v37 = vand.u32 4294901760, %v136_v28  ;;  %v143_v41 = vand.u32 4294901760, %v142_v31  ;;  %v1584_v49 = vsub.f32 %v54_v24, %v1561_v34 }
  0x10   :  { %v91_v38 = vsub.f32 %v1542_v21, %v1553_v29  ;;  %v1574_v43 = vand.u32 4294901760, %v1559_v33  ;;  %v149_v48 = vand.u32 4294901760, %v148_v32  ;;  %v1586_v50 = vand.u32 4294901760, %v63_v46 }
  0x11   :  { %v115_v39 = vsub.f32 %v1545_v22, %v1556_v30  ;;  %188 = vmatpush.msrb.mxu2 %v134_v13  ;;  %279 = vmatpush.msrb.mxu0 %v135_v20  ;;  %v1588_v51 = vand.u32 4294901760, %v50_v40  ;;  %v155_v54 = vand.u32 4294901760, %v154_v42  ;;  %v418_v56 = vsub.f32 %v52_v36, %v1581_v47  ;;  %v37_v20 = vld [vmem:[#allocation2 + $0x10] sm:$0xff] }
  0x12   :  { %138 = vmatpush.msra.mxu1 %v137_v37  ;;  %1398 = vmatpush.msra.mxu3 %v137_v37  ;;  %v1576_v44 = vand.u32 4294901760, %v91_v38  ;;  %v99_v52 = vsub.f32 %v1559_v33, %v1574_v43  ;;  %v1595_v55 = vsub.f32 %v63_v46, %v1586_v50  ;;  %v1598_v57 = vand.u32 4294901760, %v48_v53  ;;  %v31_v46 = vld [vmem:[%s1900_s0] sm:$0xff] }
  0x13   :  { %v1578_v45 = vand.u32 4294901760, %v115_v39  ;;  %191 = vmatpush.msrb.mxu2 %v140_v16  ;;  %283 = vmatpush.msrb.mxu0 %v141_v23  ;;  %v413_v58 = vand.u32 4294901760, %v1584_v49  ;;  %v424_v59 = vsub.f32 %v50_v40, %v1588_v51  ;;  %v419_v62 = vand.u32 4294901760, %v418_v56 }
  0x14   :  { %93 = vmatmul.f32.vlgmr.msra.gmra.mxu0 %v1576_v44  ;;  %144 = vmatpush.msra.mxu1 %v143_v41  ;;  %v1603_v60 = vand.u32 4294901760, %v99_v52  ;;  %v1606_v61 = vand.u32 4294901760, %v1595_v55  ;;  %v430_v63 = vsub.f32 %v48_v53, %v1598_v57  ;;  %v652_v24 = vand.u32 4294901760, %v37_v20  ;;  %v33_v53 = vld [vmem:[%s1900_s0 + $0x18] sm:$0xff] }
  0x15   :  { %117 = vmatmul.f32.vlgmr.msra.gmra.mxu2 %v1578_v45  ;;  %1399 = vmatpush.msra.mxu3 %v143_v41  ;;  %v414_v0 = vsub.f32 %v1584_v49, %v413_v58  ;;  %v425_v1 = vand.u32 4294901760, %v424_v59  ;;  %v420_v6 = vsub.f32 %v418_v56, %v419_v62 }
  0x16   :  { %194 = vmatpush.msrb.mxu2 %v146_v17  ;;  %287 = vmatpush.msrb.mxu0 %v147_v25  ;;  %v107_v2 = vsub.f32 %v1595_v55, %v1606_v61  ;;  %v431_v7 = vand.u32 4294901760, %v430_v63  ;;  %v39_v17 = vld [vmem:[#allocation2 + $0x20] sm:$0xff]  ;;  %v714_v32 = vsub.f32 %v37_v20, %v652_v24 }
  0x17   :  { %150 = vmatpush.msra.mxu1 %v149_v48  ;;  %1400 = vmatpush.msra.mxu3 %v149_v48  ;;  %v415_v8 = vand.u32 4294901760, %v414_v0  ;;  %v426_v10 = vsub.f32 %v424_v59, %v425_v1  ;;  %v421_v12 = vand.u32 4294901760, %v420_v6 }
  0x18   :  { %197 = vmatpush.msrb.mxu2 %v1536_v18  ;;  %291 = vmatpush.msrb.mxu0 %v153_v26  ;;  %v1624_v11 = vand.u32 4294901760, %v107_v2  ;;  %v432_v13 = vsub.f32 %v430_v63, %v431_v7  ;;  %v650_v18 = vand.u32 4294901760, %v39_v17  ;;  %v35_v26 = vld [vmem:[#allocation2] sm:$0xff]  ;;  %v715_v36 = vand.u32 4294901760, %v714_v32 }
  0x19   :  { %156 = vmatpush.msra.mxu1 %v155_v54  ;;  %1401 = vmatpush.msra.mxu3 %v155_v54  ;;  %v654_v28 = vand.u32 4294901760, %v35_v26 }
  0x1a   :  { %158 = vmatmul.f32.vlgmr.msra.gmra.mxu1 %v1529_v14  ;;  %170 = vmatmul.f32.vlgmr.msra.gmra.mxu3 %v1531_v15  ;;  %v708_v23 = vsub.f32 %v39_v17, %v650_v18  ;;  %v716_v39 = vsub.f32 %v714_v32, %v715_v36 }
  0x1b   :  { %232 = vmatpush.msrb.mxu3 %v1507_v3  ;;  %359 = vmatpush.msra.mxu2 %v1561_v34  ;;  %v720_v37 = vsub.f32 %v35_v26, %v654_v28 }
  0x1c   :  { %101 = vmatmul.f32.gmra.mxu0 %v1603_v60  ;;  %322 = vmatpush.msrb.mxu1 %v1507_v3  ;;  %v427_v3 = vand.u32 4294901760, %v426_v10  ;;  %v709_v31 = vand.u32 4294901760, %v708_v23  ;;  %v717_v41 = vand.u32 4294901760, %v716_v39 }
  0x1d   :  { %200 = vmatmul.f32.vlgmr.msrb.gmra.mxu2 %v1542_v21  ;;  %234 = vmatpush.msrb.mxu3 %v1509_v4  ;;  %v721_v40 = vand.u32 4294901760, %v720_v37 }
  0x1e   :  { %361 = vmatpush.msra.mxu2 %v1581_v47  ;;  %466 = vmatpush.msra.mxu0 %v1584_v49  ;;  %v710_v35 = vsub.f32 %v708_v23, %v709_v31 }
  0x1f   :  { %236 = vmatpush.msrb.mxu3 %v1511_v5  ;;  %324 = vmatpush.msrb.mxu1 %v1509_v4  ;;  %v433_v4 = vand.u32 4294901760, %v432_v13  ;;  %v722_v42 = vsub.f32 %v720_v37, %v721_v40 }
  0x20   :  { %363 = vmatpush.msra.mxu2 %v1588_v51  ;;  %469 = vmatpush.msra.mxu0 %v418_v56  ;;  %v711_v38 = vand.u32 4294901760, %v710_v35 }
  0x21   :  { %238 = vmatpush.msrb.mxu3 %v1519_v9  ;;  %326 = vmatpush.msrb.mxu1 %v1511_v5  ;;  %v41_v5 = vld [vmem:[#allocation2 + $0x30] sm:$0xff] }
  0x22   :  { %365 = vmatpush.msra.mxu2 %v1598_v57  ;;  %162 = vmatmul.f32.gmra.mxu1 %v1548_v27 }
  0x23   :  { %242 = vmatmul.f32.vlgmr.msrb.gmra.mxu3 %v1553_v29  ;;  %328 = vmatpush.msrb.mxu1 %v1519_v9  ;;  %v648_v9 = vand.u32 4294901760, %v41_v5 }
  0x24   :  { %416 = vmatpush.msra.mxu3 %v415_v8  ;;  %109 = vmatmul.f32.gmra.mxu0 %v1624_v11 }
  0x25   :  { %205 = vmatmul.f32.gmra.mxu2 %v1559_v33  ;;  %510 = vmatpush.msra.mxu1 %v1561_v34  ;;  %v702_v16 = vsub.f32 %v41_v5, %v648_v9 }
  0x26   :  { %422 = vmatpush.msra.mxu3 %v421_v12  ;;  %557 = vmatpush.msrb.mxu2 %v413_v58  ;;  %v631_v58 = vsel %vm55_vm0, %v33_v53, 0 }
  0x27   :  { %472 = vmatpush.msra.mxu0 %v424_v59  ;;  %512 = vmatpush.msra.mxu1 %v1581_v47  ;;  %v703_v19 = vand.u32 4294901760, %v702_v16 }
  0x28   :  { %428 = vmatpush.msra.mxu3 %v427_v3  ;;  %561 = vmatpush.msrb.mxu2 %v419_v62  ;;  %v1720_v62 = vand.u32 4294901760, %v631_v58 }
  0x29   :  { %475 = vmatpush.msra.mxu0 %v430_v63  ;;  %514 = vmatpush.msra.mxu1 %v1588_v51  ;;  %v704_v25 = vsub.f32 %v702_v16, %v703_v19  ;;  %v34_v63 = vld [vmem:[%s1900_s0 + $0x20] sm:$0xff] }
  0x2a   :  { %434 = vmatpush.msra.mxu3 %v433_v4  ;;  %166 = vmatmul.f32.gmra.mxu1 %v1586_v50  ;;  %v1733_v2 = vsub.f32 %v631_v58, %v1720_v62 }
  0x2b   :  { %248 = vmatmul.f32.gmra.mxu3 %v1574_v43  ;;  %565 = vmatpush.msrb.mxu2 %v425_v1 }
  0x2c   :  { %600 = vmatpush.msrb.mxu3 %v1561_v34  ;;  %293 = vmatmul.f32.vlgmr.msrb.gmra.mxu0 %v1529_v14  ;;  %v705_v34 = vand.u32 4294901760, %v704_v25 }
  0x2d   :  { %210 = vmatmul.f32.gmra.mxu2 %v1595_v55  ;;  %516 = vmatpush.msra.mxu1 %v1598_v57 }
  0x2e   :  { %602 = vmatpush.msrb.mxu3 %v1581_v47  ;;  %569 = vmatpush.msrb.mxu2 %v431_v7 }
  0x2f   :  { %649 = vmatpush.msrb.mxu0 %v648_v9 }
  0x30   :  { %604 = vmatpush.msrb.mxu3 %v1588_v51 }
  0x31   :  { %651 = vmatpush.msrb.mxu0 %v650_v18 }
  0x32   :  { %606 = vmatpush.msrb.mxu3 %v1598_v57  ;;  %330 = vmatmul.f32.vlgmr.msrb.gmra.mxu1 %v1529_v14  ;;  %v40_v57 = vld [vmem:[#allocation2 + $0x28] sm:$0xff] }
  0x33   :  { %254 = vmatmul.f32.gmra.mxu3 %v1606_v61  ;;  %653 = vmatpush.msrb.mxu0 %v652_v24  ;;  %v1712_v59 = vand.u32 4294901760, %v40_v57 }
  0x34   :  { %297 = vmatmul.f32.gmra.mxu0 %v1548_v27  ;;  %706 = vmatpush.msrb.mxu1 %v705_v34 }
  0x35   :  { %215 = vmatmul.f32.gmra.mxu2 %v1545_v22  ;;  %655 = vmatpush.msrb.mxu0 %v654_v28  ;;  %v986_v0 = vsub.f32 %v40_v57, %v1712_v59 }
  0x36   :  { %712 = vmatpush.msrb.mxu1 %v711_v38 }
  0x37   :  { %v987_v6 = vand.u32 4294901760, %v986_v0 }
  0x38   :  { %718 = vmatpush.msrb.mxu1 %v717_v41 }
  0x39   :  { %v988_v8 = vsub.f32 %v986_v0, %v987_v6 }
  0x3a   :  { %334 = vmatmul.f32.gmra.mxu1 %v1548_v27 }
  0x3b   :  { %260 = vmatmul.f32.gmra.mxu3 %v1556_v30  ;;  %v989_v13 = vand.u32 4294901760, %v988_v8 }
  0x3c   :  { %301 = vmatmul.f32.gmra.mxu0 %v1586_v50 }
  0x3d   :  { %371 = vmatmul.f32.vlgmr.msra.gmra.mxu2 %v1576_v44  ;;  %v723_v44 = vand.u32 4294901760, %v722_v42 }
  0x3e   :  { %756 = vmatpush.msra.mxu2 %v702_v16  ;;  %v36_v16 = vld [vmem:[#allocation2 + $0x8] sm:$0xff] }
  0x3f   :  { %724 = vmatpush.msrb.mxu1 %v723_v44  ;;  %v932_v17 = vand.u32 4294901760, %v36_v16 }
  0x40   :  { %759 = vmatpush.msra.mxu2 %v708_v23 }
  0x41   :  { %v998_v23 = vsub.f32 %v36_v16, %v932_v17 }
  0x42   :  { %338 = vmatmul.f32.gmra.mxu1 %v1586_v50  ;;  %762 = vmatpush.msra.mxu2 %v714_v32 }
  0x43   :  { %436 = vmatmul.f32.vlgmr.msra.gmra.mxu3 %v1529_v14 }
  0x44   :  { %800 = vmatpush.msra.mxu3 %v648_v9  ;;  %305 = vmatmul.f32.gmra.mxu0 %v1531_v15 }
  0x45   :  { %379 = vmatmul.f32.gmra.mxu2 %v1603_v60 }
  0x46   :  { %802 = vmatpush.msra.mxu3 %v650_v18  ;;  %765 = vmatpush.msra.mxu2 %v720_v37 }
  0x48   :  { %804 = vmatpush.msra.mxu3 %v652_v24 }
  0x4a   :  { %342 = vmatmul.f32.gmra.mxu1 %v1531_v15  ;;  %806 = vmatpush.msra.mxu3 %v654_v28 }
  0x4b   :  { %440 = vmatmul.f32.gmra.mxu3 %v1548_v27 }
  0x4c   :  { %478 = vmatmul.f32.vlgmr.msra.gmra.mxu0 %v1542_v21  ;;  %v625_v21 = vsel %vm55_vm0, %v31_v46, 0 }
  0x4d   :  { %387 = vmatmul.f32.gmra.mxu2 %v1624_v11  ;;  %847 = vmatpush.msra.mxu0 %v703_v19  ;;  %v1671_v47 = vand.u32 4294901760, %v625_v21  ;;  %v1740_v11 = vand.u32 4294901760, %v1733_v2 }
  0x4f   :  { %851 = vmatpush.msra.mxu0 %v709_v31  ;;  %v675_v4 = vsub.f32 %v1733_v2, %v1740_v11 }
  0x51   :  { %855 = vmatpush.msra.mxu0 %v715_v36 }
  0x52   :  { %520 = vmatmul.f32.vlgmr.msra.gmra.mxu1 %v1553_v29  ;;  %v32_v29 = vld [vmem:[%s1900_s0 + $0x8] sm:$0xff] }
  0x53   :  { %444 = vmatmul.f32.gmra.mxu3 %v1586_v50  ;;  %890 = vmatpush.msra.mxu1 %v648_v9  ;;  %v628_v48 = vsel %vm55_vm0, %v32_v29, 0 }
  0x54   :  { %483 = vmatmul.f32.gmra.mxu0 %v1559_v33  ;;  %v1681_v33 = vsub.f32 %v625_v21, %v1671_v47  ;;  %v1693_v52 = vand.u32 4294901760, %v628_v48 }
  0x55   :  { %395 = vmatmul.f32.gmra.mxu2 %v1578_v45  ;;  %859 = vmatpush.msra.mxu0 %v721_v40  ;;  %v42_v45 = vld [vmem:[#allocation2 + $0x38] sm:$0xff] }
  0x56   :  { %892 = vmatpush.msra.mxu1 %v650_v18  ;;  %v1684_v49 = vand.u32 4294901760, %v42_v45  ;;  %v1691_v51 = vand.u32 4294901760, %v1681_v33  ;;  %v1706_v56 = vsub.f32 %v628_v48, %v1693_v52  ;;  %v1755_v18 = vand.u32 4294901760, %v675_v4 }
  0x58   :  { %894 = vmatpush.msra.mxu1 %v652_v24  ;;  %v999_v24 = vand.u32 4294901760, %v998_v23 }
  0x5a   :  { %896 = vmatpush.msra.mxu1 %v654_v28  ;;  %v1000_v26 = vsub.f32 %v998_v23, %v999_v24 }
  0x5b   :  { %448 = vmatmul.f32.gmra.mxu3 %v1531_v15  ;;  %526 = vmatmul.f32.gmra.mxu1 %v1574_v43  ;;  %v1688_v43 = vsub.f32 %v42_v45, %v1684_v49 }
  0x5c   :  { %488 = vmatmul.f32.gmra.mxu0 %v1595_v55  ;;  %v659_v55 = vsub.f32 %v1681_v33, %v1691_v51  ;;  %v1001_v28 = vand.u32 4294901760, %v1000_v26 }
  0x5d   :  { %571 = vmatmul.f32.vlgmr.msrb.gmra.mxu2 %v1529_v14  ;;  %v981_v54 = vand.u32 4294901760, %v1688_v43 }
  0x5e   :  { %927 = vmatpush.msrb.mxu2 %v1684_v49 }
  0x60   :  { %929 = vmatpush.msrb.mxu2 %v1712_v59 }
  0x63   :  { %532 = vmatmul.f32.gmra.mxu1 %v1606_v61  ;;  %608 = vmatmul.f32.vlgmr.msrb.gmra.mxu3 %v1529_v14  ;;  %v982_v14 = vsub.f32 %v1688_v43, %v981_v54  ;;  %v1718_v61 = vand.u32 4294901760, %v1706_v56 }
  0x64   :  { %493 = vmatmul.f32.gmra.mxu0 %v1545_v22  ;;  %v1715_v22 = vand.u32 4294901760, %v659_v55 }
  0x65   :  { %575 = vmatmul.f32.gmra.mxu2 %v1548_v27  ;;  %v983_v60 = vand.u32 4294901760, %v982_v14  ;;  %v667_v1 = vsub.f32 %v1706_v56, %v1718_v61 }
  0x67   :  { %984 = vmatpush.msrb.mxu3 %v983_v60  ;;  %v1737_v10 = vand.u32 4294901760, %v667_v1 }
  0x69   :  { %990 = vmatpush.msrb.mxu3 %v989_v13 }
  0x6b   :  { %538 = vmatmul.f32.gmra.mxu1 %v1556_v30  ;;  %612 = vmatmul.f32.gmra.mxu3 %v1548_v27  ;;  %v38_v30 = vld [vmem:[#allocation2 + $0x18] sm:$0xff]  ;;  %v634_v27 = vsel %vm55_vm0, %v34_v63, 0 }
  0x6c   :  { %661 = vmatmul.f32.vlgmr.msrb.gmra.mxu0 %v1715_v22  ;;  %v930_v7 = vand.u32 4294901760, %v38_v30  ;;  %v1742_v12 = vand.u32 4294901760, %v634_v27 }
  0x6d   :  { %579 = vmatmul.f32.gmra.mxu2 %v1586_v50  ;;  %1034 = vmatpush.msrb.mxu0 %v1688_v43 }
  0x6e   :  { %931 = vmatpush.msrb.mxu2 %v930_v7  ;;  %v992_v3 = vsub.f32 %v38_v30, %v930_v7  ;;  %v1752_v5 = vsub.f32 %v634_v27, %v1742_v12 }
  0x6f   :  { %1037 = vmatpush.msrb.mxu0 %v986_v0 }
  0x70   :  { %v993_v9 = vand.u32 4294901760, %v992_v3  ;;  %v1758_v19 = vand.u32 4294901760, %v1752_v5  ;;  %933 = vmatpush.msrb.mxu2 %v932_v17 }
  0x71   :  { %1040 = vmatpush.msrb.mxu0 %v992_v3 }
  0x72   :  { %v683_v25 = vsub.f32 %v1752_v5, %v1758_v19 }
  0x73   :  { %616 = vmatmul.f32.gmra.mxu3 %v1586_v50  ;;  %726 = vmatmul.f32.vlgmr.msrb.gmra.mxu1 %v1671_v47  ;;  %v994_v50 = vsub.f32 %v992_v3, %v993_v9 }
  0x74   :  { %1078 = vmatpush.msrb.mxu1 %v1684_v49  ;;  %669 = vmatmul.f32.gmra.mxu0 %v1737_v10  ;;  %v684_v31 = vand.u32 4294901760, %v683_v25 }
  0x75   :  { %583 = vmatmul.f32.gmra.mxu2 %v1531_v15  ;;  %v995_v20 = vand.u32 4294901760, %v994_v50  ;;  %1043 = vmatpush.msrb.mxu0 %v998_v23 }
  0x76   :  { %1080 = vmatpush.msrb.mxu1 %v1712_v59 }
  0x77   :  { %996 = vmatpush.msrb.mxu3 %v995_v20 }
  0x78   :  { %1082 = vmatpush.msrb.mxu1 %v930_v7 }
  0x79   :  { %1002 = vmatpush.msrb.mxu3 %v1001_v28 }
  0x7a   :  { %1084 = vmatpush.msrb.mxu1 %v932_v17 }
  0x7b   :  { %620 = vmatmul.f32.gmra.mxu3 %v1531_v15  ;;  %730 = vmatmul.f32.gmra.mxu1 %v1693_v52 }
  0x7c   :  { %677 = vmatmul.f32.gmra.mxu0 %v1755_v18 }
  0x7d   :  { %768 = vmatmul.f32.vlgmr.msra.gmra.mxu2 %v1681_v33 }
  0x7e   :  { %1125 = vmatpush.msra.mxu2 %v981_v54 }
  0x80   :  { %1129 = vmatpush.msra.mxu2 %v987_v6 }
  0x82   :  { %1133 = vmatpush.msra.mxu2 %v993_v9 }
  0x83   :  { %734 = vmatmul.f32.gmra.mxu1 %v1720_v62  ;;  %810 = vmatmul.f32.vlgmr.msra.gmra.mxu3 %v1691_v51 }
  0x84   :  { %1168 = vmatpush.msra.mxu3 %v1684_v49  ;;  %1137 = vmatpush.msra.mxu2 %v999_v24 }
  0x85   :  { %685 = vmatmul.f32.gmra.mxu0 %v684_v31  ;;  %773 = vmatmul.f32.gmra.mxu2 %v1706_v56 }
  0x86   :  { %1170 = vmatpush.msra.mxu3 %v1712_v59 }
  0x88   :  { %1172 = vmatpush.msra.mxu3 %v930_v7 }
  0x8a   :  { %1174 = vmatpush.msra.mxu3 %v932_v17 }
  0x8b   :  { %738 = vmatmul.f32.gmra.mxu1 %v1742_v12  ;;  %816 = vmatmul.f32.gmra.mxu3 %v1718_v61 }
  0x8d   :  { %778 = vmatmul.f32.gmra.mxu2 %v1733_v2  ;;  %861 = vmatmul.f32.vlgmr.msra.gmra.mxu0 %v1671_v47 }
  0x91   :  { %v94_v15 = vpop.f32.mrf.mxu0 }
  0x93   :  { %822 = vmatmul.f32.gmra.mxu3 %v1740_v11  ;;  %898 = vmatmul.f32.vlgmr.msra.gmra.mxu1 %v1671_v47 }
  0x95   :  { %783 = vmatmul.f32.gmra.mxu2 %v1752_v5  ;;  %865 = vmatmul.f32.gmra.mxu0 %v1693_v52 }
  0x97   :  { %v159_v34 = vpop.f32.mrf.mxu1 }
  0x98   :  { %v118_v32 = vpop.f32.mrf.mxu2  ;;  %v160_v37 = vadd.f32 %v159_v34, %v94_v15 }
  0x99   :  { %v102_v35 = vpop.f32.mrf.mxu0 }
  0x9b   :  { %828 = vmatmul.f32.gmra.mxu3 %v1758_v19  ;;  %902 = vmatmul.f32.gmra.mxu1 %v1693_v52 }
  0x9d   :  { %869 = vmatmul.f32.gmra.mxu0 %v1720_v62  ;;  %939 = vmatmul.f32.vlgmr.msrb.gmra.mxu2 %v1715_v22  ;;  %v171_v36 = vpop.f32.mrf.mxu3 }
  0x9e   :  { %v172_v38 = vadd.f32 %v171_v36, %v118_v32 }
  0x9f   :  { %v163_v39 = vpop.f32.mrf.mxu1 }
  0xa0   :  { %v201_v40 = vpop.f32.mrf.mxu2  ;;  %v164_v41 = vadd.f32 %v163_v39, %v102_v35 }
  0xa1   :  { %v110_v42 = vpop.f32.mrf.mxu0  ;;  %v202_v44 = vadd.f32 %v201_v40, %v160_v37 }
  0xa3   :  { %906 = vmatmul.f32.gmra.mxu1 %v1720_v62  ;;  %1004 = vmatmul.f32.vlgmr.msrb.gmra.mxu3 %v1671_v47 }
  0xa5   :  { %873 = vmatmul.f32.gmra.mxu0 %v1742_v12  ;;  %947 = vmatmul.f32.gmra.mxu2 %v1737_v10 }
  0xa6   :  { %v243_v46 = vpop.f32.mrf.mxu3 }
  0xa7   :  { %v244_v21 = vadd.f32 %v243_v46, %v202_v44  ;;  %v167_v29 = vpop.f32.mrf.mxu1 }
  0xa8   :  { %v206_v45 = vpop.f32.mrf.mxu2  ;;  %v168_v48 = vadd.f32 %v167_v29, %v110_v42 }
  0xa9   :  { %v207_v49 = vadd.f32 %v206_v45, %v164_v41  ;;  %v294_v43 = vpop.f32.mrf.mxu0 }
  0xaa   :  { %v295_v53 = vadd.f32 %v294_v43, %v244_v21 }
  0xab   :  { %910 = vmatmul.f32.gmra.mxu1 %v1742_v12  ;;  %1008 = vmatmul.f32.gmra.mxu3 %v1693_v52 }
  0xad   :  { %955 = vmatmul.f32.gmra.mxu2 %v1755_v18  ;;  %1046 = vmatmul.f32.vlgmr.msrb.gmra.mxu0 %v1681_v33 }
  0xae   :  { %v249_v54 = vpop.f32.mrf.mxu3 }
  0xaf   :  { %v250_v55 = vadd.f32 %v249_v54, %v207_v49  ;;  %v331_v57 = vpop.f32.mrf.mxu1 }
  0xb0   :  { %v211_v14 = vpop.f32.mrf.mxu2  ;;  %v1793_v59 = vadd.f32 %v331_v57, %v295_v53 }
  0xb1   :  { %v212_v58 = vadd.f32 %v211_v14, %v168_v48  ;;  %v298_v60 = vpop.f32.mrf.mxu0 }
  0xb2   :  { %v299_v22 = vadd.f32 %v298_v60, %v250_v55 }
  0xb3   :  { %1012 = vmatmul.f32.gmra.mxu3 %v1720_v62  ;;  %1088 = vmatmul.f32.vlgmr.msrb.gmra.mxu1 %v1691_v51 }
  0xb5   :  { %963 = vmatmul.f32.gmra.mxu2 %v684_v31  ;;  %1051 = vmatmul.f32.gmra.mxu0 %v1706_v56 }
  0xb6   :  { %v255_v63 = vpop.f32.mrf.mxu3 }
  0xb7   :  { %v256_v0 = vadd.f32 %v255_v63, %v212_v58  ;;  %v335_v33 = vpop.f32.mrf.mxu1 }
  0xb8   :  { %v216_v1 = vpop.f32.mrf.mxu2  ;;  %v1798_v30 = vadd.f32 %v335_v33, %v299_v22 }
  0xb9   :  { %v217_v6 = vadd.f32 %v216_v1, %v172_v38  ;;  %v302_v27 = vpop.f32.mrf.mxu0 }
  0xba   :  { %v303_v7 = vadd.f32 %v302_v27, %v256_v0 }
  0xbb   :  { %1016 = vmatmul.f32.gmra.mxu3 %v1742_v12  ;;  %1094 = vmatmul.f32.gmra.mxu1 %v1718_v61 }
  0xbd   :  { %1056 = vmatmul.f32.gmra.mxu0 %v1733_v2  ;;  %1139 = vmatmul.f32.vlgmr.msra.gmra.mxu2 %v1671_v47 }
  0xbe   :  { %v261_v51 = vpop.f32.mrf.mxu3 }
  0xbf   :  { %v262_v8 = vadd.f32 %v261_v51, %v217_v6  ;;  %v339_v56 = vpop.f32.mrf.mxu1 }
  0xc0   :  { %v372_v10 = vpop.f32.mrf.mxu2  ;;  %v1804_v13 = vadd.f32 %v339_v56, %v303_v7 }
  0xc1   :  { %v306_v3 = vpop.f32.mrf.mxu0 }
  0xc2   :  { %v307_v4 = vadd.f32 %v306_v3, %v262_v8 }
  0xc3   :  { %1100 = vmatmul.f32.gmra.mxu1 %v1740_v11  ;;  %1176 = vmatmul.f32.vlgmr.msra.gmra.mxu3 %v1671_v47 }
  0xc5   :  { %1061 = vmatmul.f32.gmra.mxu0 %v1752_v5  ;;  %1143 = vmatmul.f32.gmra.mxu2 %v1693_v52 }
  0xc6   :  { %v437_v61 = vpop.f32.mrf.mxu3 }
  0xc7   :  { %v438_v2 = vadd.f32 %v437_v61, %v372_v10  ;;  %v343_v9 = vpop.f32.mrf.mxu1 }
  0xc8   :  { %v380_v50 = vpop.f32.mrf.mxu2  ;;  %v1810_v16 = vadd.f32 %v343_v9, %v307_v4 }
  0xc9   :  { %v479_v17 = vpop.f32.mrf.mxu0 }
  0xca   :  { %v480_v18 = vadd.f32 %v479_v17, %v438_v2 }
  0xcb   :  { %1106 = vmatmul.f32.gmra.mxu1 %v1758_v19  ;;  %1180 = vmatmul.f32.gmra.mxu3 %v1693_v52 }
  0xcd   :  { %1147 = vmatmul.f32.gmra.mxu2 %v1720_v62 }
  0xce   :  { %v441_v11 = vpop.f32.mrf.mxu3 }
  0xcf   :  { %v442_v47 = vadd.f32 %v441_v11, %v380_v50  ;;  %v521_v5 = vpop.f32.mrf.mxu1 }
  0xd0   :  { %v388_v20 = vpop.f32.mrf.mxu2  ;;  %v522_v23 = vadd.f32 %v521_v5, %v480_v18  ;;  %v1393_v18 = vld [vmem:[%s1902_s2 + $0x38] sm:$0xff]  ;;  %v1392_v5 = vld [vmem:[%s1902_s2 + $0x30] sm:$0xff] }
  0xd1   :  { %v484_v24 = vpop.f32.mrf.mxu0  ;;  %1270 = vmatpush.bf16.msra.mxu0 %v1393_v18  ;;  %1402 = vmatpush.bf16.msra.mxu1 %v1393_v18 }
  0xd2   :  { %v485_v25 = vadd.f32 %v484_v24, %v442_v47 }
  0xd3   :  { %1184 = vmatmul.f32.gmra.mxu3 %v1720_v62 }
  0xd5   :  { %1151 = vmatmul.f32.gmra.mxu2 %v1742_v12  ;;  %1271 = vmatpush.bf16.msra.mxu0 %v1392_v5 }
  0xd6   :  { %v445_v26 = vpop.f32.mrf.mxu3  ;;  %1403 = vmatpush.bf16.msra.mxu1 %v1392_v5 }
  0xd7   :  { %v446_v28 = vadd.f32 %v445_v26, %v388_v20 }
  0xd8   :  { %v396_v31 = vpop.f32.mrf.mxu2  ;;  %v527_v15 = vpop.f32.mrf.mxu1 }
  0xd9   :  { %v528_v19 = vadd.f32 %v527_v15, %v485_v25  ;;  %v489_v32 = vpop.f32.mrf.mxu0  ;;  %v1391_v25 = vld [vmem:[%s1902_s2 + $0x28] sm:$0xff] }
  0xda   :  { %v490_v52 = vadd.f32 %v489_v32, %v446_v28  ;;  %1272 = vmatpush.bf16.msra.mxu0 %v1391_v25  ;;  %1404 = vmatpush.bf16.msra.mxu1 %v1391_v25  ;;  %v1390_v28 = vld [vmem:[%s1902_s2 + $0x20] sm:$0xff]  ;;  %v1389_v32 = vld [vmem:[%s1902_s2 + $0x18] sm:$0xff] }
  0xdb   :  { %1188 = vmatmul.f32.gmra.mxu3 %v1742_v12 }
  0xde   :  { %v449_v34 = vpop.f32.mrf.mxu3  ;;  %1273 = vmatpush.bf16.msra.mxu0 %v1390_v28  ;;  %1405 = vmatpush.bf16.msra.mxu1 %v1390_v28 }
  0xdf   :  { %v450_v35 = vadd.f32 %v449_v34, %v396_v31  ;;  %v1388_v34 = vld [vmem:[%s1902_s2 + $0x10] sm:$0xff] }
  0xe0   :  { %v533_v36 = vpop.f32.mrf.mxu1  ;;  %v572_v37 = vpop.f32.mrf.mxu2 }
  0xe1   :  { %v534_v38 = vadd.f32 %v533_v36, %v490_v52  ;;  %v573_v39 = vadd.f32 %v572_v37, %v522_v23  ;;  %v494_v40 = vpop.f32.mrf.mxu0  ;;  %v1387_v37 = vld [vmem:[%s1902_s2 + $0x8] sm:$0xff] }
  0xe2   :  { %v495_v41 = vadd.f32 %v494_v40, %v450_v35  ;;  %1274 = vmatpush.bf16.msra.mxu0 %v1389_v32  ;;  %1406 = vmatpush.bf16.msra.mxu1 %v1389_v32  ;;  %v1386_v40 = vld [vmem:[%s1902_s2] sm:$0xff]  ;;  %s1481_s2 = smov [#allocation5]  }
  0xe3   :  { %s1338_s21 = sshll.u32 %s1481_s2, 4  ;;  %s1339_s21 = int_to_ptr.vmem [resolvable:$true] %s1338_s21 }
  0xe6   :  { %v609_v62 = vpop.f32.mrf.mxu3  ;;  %1275 = vmatpush.bf16.msra.mxu0 %v1388_v34  ;;  %1407 = vmatpush.bf16.msra.mxu1 %v1388_v34 }
  0xe7   :  { %v1818_v42 = vadd.f32 %v609_v62, %v573_v39 }
  0xe8   :  { %v539_v44 = vpop.f32.mrf.mxu1  ;;  %v576_v46 = vpop.f32.mrf.mxu2 }
  0xe9   :  { %v540_v21 = vadd.f32 %v539_v44, %v495_v41  ;;  %v577_v29 = vadd.f32 %v576_v46, %v528_v19  ;;  %v662_v45 = vpop.f32.mrf.mxu0 }
  0xea   :  { %v663_v48 = vadd.f32 %v662_v45, %v1793_v59  ;;  %1276 = vmatpush.bf16.msra.mxu0 %v1387_v37  ;;  %1408 = vmatpush.bf16.msra.mxu1 %v1387_v37 }
  0xee   :  { %v613_v49 = vpop.f32.mrf.mxu3  ;;  %1277 = vmatpush.bf16.msra.mxu0 %v1386_v40  ;;  %1409 = vmatpush.bf16.msra.mxu1 %v1386_v40 }
  0xef   :  { %v1821_v12 = vadd.f32 %v613_v49, %v577_v29 }
  0xf0   :  { %v580_v43 = vpop.f32.mrf.mxu2  ;;  %v727_v53 = vpop.f32.mrf.mxu1 }
  0xf1   :  { %v581_v54 = vadd.f32 %v580_v43, %v534_v38  ;;  %v728_v55 = vadd.f32 %v727_v53, %v663_v48  ;;  %v1823_v14 = vpop.f32.mrf.mxu0 }
  0xf2   :  { %v671_v53 = vadd.f32 %v1823_v14, %v1798_v30 }
  0xf6   :  { %v617_v57 = vpop.f32.mrf.mxu3 }
  0xf7   :  { %v1825_v58 = vadd.f32 %v617_v57, %v581_v54 }
  0xf8   :  { %v584_v60 = vpop.f32.mrf.mxu2  ;;  %v1827_v22 = vpop.f32.mrf.mxu1 }
  0xf9   :  { %v585_v63 = vadd.f32 %v584_v60, %v540_v21  ;;  %v678_v0 = vpop.f32.mrf.mxu0  ;;  %v732_v60 = vadd.f32 %v1827_v22, %v671_v53 }
  0xfa   :  { %v679_v1 = vadd.f32 %v678_v0, %v1804_v13 }
  0xfe   :  { %v621_v59 = vpop.f32.mrf.mxu3 }
  0xff   :  { %v1830_v33 = vadd.f32 %v621_v59, %v585_v63 }
 0x100   :  { %v735_v6 = vpop.f32.mrf.mxu1  ;;  %v769_v27 = vpop.f32.mrf.mxu2 }
 0x101   :  { %v736_v7 = vadd.f32 %v735_v6, %v679_v1  ;;  %v770_v51 = vadd.f32 %v769_v27, %v728_v55 }
 0x102   :  { %v1832_v8 = vpop.f32.mrf.mxu0 }
 0x106   :  { %v811_v56 = vpop.f32.mrf.mxu3 }
 0x107   :  { %v812_v10 = vadd.f32 %v811_v56, %v770_v51 }
 0x108   :  { %v1834_v3 = vpop.f32.mrf.mxu1  ;;  %v1836_v4 = vpop.f32.mrf.mxu2 }
 0x10a   :  { %v862_v2 = vpop.f32.mrf.mxu0 }
 0x10b   :  { %v863_v54 = vadd.f32 %v862_v2, %v812_v10 }
 0x10e   :  { %v1838_v61 = vpop.f32.mrf.mxu3 }
 0x110   :  { %v779_v9 = vpop.f32.mrf.mxu2  ;;  %v899_v50 = vpop.f32.mrf.mxu1 }
 0x111   :  { %v780_v13 = vadd.f32 %v779_v9, %v736_v7  ;;  %v900_v63 = vadd.f32 %v899_v50, %v863_v54 }
 0x112   :  { %v866_v20 = vpop.f32.mrf.mxu0 }
 0x113   :  { %v1192_v56 = vmul.f32 %v900_v63, %v900_v63 }
 0x116   :  { %v823_v17 = vpop.f32.mrf.mxu3 }
 0x117   :  { %v1843_v11 = vadd.f32 %v823_v17, %v780_v13 }
 0x118   :  { %v1845_v47 = vpop.f32.mrf.mxu2  ;;  %v903_v23 = vpop.f32.mrf.mxu1 }
 0x11a   :  { %v1858_v31 = vpop.f32.mrf.mxu0 }
 0x11e   :  { %v1850_v24 = vpop.f32.mrf.mxu3 }
 0x120   :  { %v940_v26 = vpop.f32.mrf.mxu2  ;;  %v1860_v15 = vpop.f32.mrf.mxu1 }
 0x121   :  { %v941_v21 = vadd.f32 %v940_v26, %v1818_v42  ;;  %v775_v42 = vadd.f32 %v1836_v4, %v732_v60 }
 0x122   :  { %v1868_v35 = vpop.f32.mrf.mxu0 }
 0x123   :  { %v818_v51 = vadd.f32 %v1838_v61, %v775_v42  ;;  %v687_v61 = vadd.f32 %v1832_v8, %v1810_v16  ;;  %v1480_v42 = vmov 0.0  }
 0x125   :  { %v867_v14 = vadd.f32 %v866_v20, %v818_v51  ;;  %v871_v20 = vadd.f32 %v1858_v31, %v1843_v11 }
 0x126   :  { %v1005_v19 = vpop.f32.mrf.mxu3 }
 0x127   :  { %v1006_v45 = vadd.f32 %v1005_v19, %v941_v21  ;;  %v904_v22 = vadd.f32 %v903_v23, %v867_v14  ;;  %v740_v23 = vadd.f32 %v1834_v3, %v687_v61 }
 0x128   :  { %v948_v52 = vpop.f32.mrf.mxu2  ;;  %v1873_v38 = vpop.f32.mrf.mxu1 }
 0x129   :  { %v949_v0 = vadd.f32 %v948_v52, %v1821_v12  ;;  %v1193_v26 = vmul.f32 %v904_v22, %v904_v22 }
 0x12a   :  { %v1047_v62 = vpop.f32.mrf.mxu0 }
 0x12b   :  { %v1048_v49 = vadd.f32 %v1047_v62, %v1006_v45 }
 0x12e   :  { %v1009_v36 = vpop.f32.mrf.mxu3 }
 0x12f   :  { %v1010_v6 = vadd.f32 %v1009_v36, %v949_v0 }
 0x130   :  { %v956_v39 = vpop.f32.mrf.mxu2  ;;  %v1089_v46 = vpop.f32.mrf.mxu1 }
 0x131   :  { %v1090_v55 = vadd.f32 %v1089_v46, %v1048_v49  ;;  %v957_v50 = vadd.f32 %v956_v39, %v1825_v58  ;;  %v908_v58 = vadd.f32 %v1860_v15, %v871_v20 }
 0x132   :  { %v1052_v43 = vpop.f32.mrf.mxu0 }
 0x133   :  { %v1053_v9 = vadd.f32 %v1052_v43, %v1010_v6  ;;  %v1194_v11 = vmul.f32 %v908_v58, %v908_v58 }
 0x136   :  { %v1013_v41 = vpop.f32.mrf.mxu3 }
 0x137   :  { %v1014_v5 = vadd.f32 %v1013_v41, %v957_v50  ;;  %v785_v41 = vadd.f32 %v1845_v47, %v740_v23 }
 0x138   :  { %v964_v44 = vpop.f32.mrf.mxu2  ;;  %v1095_v57 = vpop.f32.mrf.mxu1 }
 0x139   :  { %v1096_v10 = vadd.f32 %v1095_v57, %v1053_v9  ;;  %v965_v34 = vadd.f32 %v964_v44, %v1830_v33  ;;  %v830_v8 = vadd.f32 %v1850_v24, %v785_v41  ;;  %v1297_v24 = vlaneseq }
 0x13a   :  { %v1057_v13 = vpop.f32.mrf.mxu0 }
 0x13b   :  { %v1058_v28 = vadd.f32 %v1057_v13, %v1014_v5  ;;  %v875_v15 = vadd.f32 %v1868_v35, %v830_v8  ;;  %v1298_v60 = vshrl.u32 %v1297_v24, 7 }
 0x13d   :  { %v912_v44 = vadd.f32 %v1873_v38, %v875_v15  ;;  %v1299_v35 = vadd.s32 8, %v1298_v60 }
 0x13e   :  { %v1017_v29 = vpop.f32.mrf.mxu3 }
 0x13f   :  { %v1018_v62 = vadd.f32 %v1017_v29, %v965_v34  ;;  %v1195_v47 = vmul.f32 %v912_v44, %v912_v44  ;;  %vm1301_vm1 = vcmp.lt.s32.totalorder %v1299_v35, 9 }
 0x140   :  { %v1140_v48 = vpop.f32.mrf.mxu2  ;;  %v1101_v17 = vpop.f32.mrf.mxu1  ;;  %v1385_v6 = vsel %vm1301_vm1, 1.0, %v1480_v42 }
 0x141   :  { %v1141_v1 = vadd.f32 %v1140_v48, %v1090_v55  ;;  %v1102_v32 = vadd.f32 %v1101_v17, %v1058_v28 }
 0x142   :  { %v1062_v39 = vpop.f32.mrf.mxu0 }
 0x143   :  { %v1063_v31 = vadd.f32 %v1062_v39, %v1018_v62 }
 0x146   :  { %v1177_v59 = vpop.f32.mrf.mxu3 }
 0x147   :  { %v1178_v27 = vadd.f32 %v1177_v59, %v1141_v1 }
 0x148   :  { %v1144_v7 = vpop.f32.mrf.mxu2  ;;  %v1107_v16 = vpop.f32.mrf.mxu1 }
 0x149   :  { %v1196_v30 = vmul.f32 %v1178_v27, %v1178_v27  ;;  %v1145_v12 = vadd.f32 %v1144_v7, %v1096_v10  ;;  %v1108_v45 = vadd.f32 %v1107_v16, %v1063_v31 }
 0x14b   :  { %v1200_v2 = vadd.f32 %v1196_v30, %v1192_v56 }
 0x14e   :  { %v1181_v18 = vpop.f32.mrf.mxu3 }
 0x14f   :  { %v1182_v4 = vadd.f32 %v1181_v18, %v1145_v12 }
 0x150   :  { %v1148_v25 = vpop.f32.mrf.mxu2 }
 0x151   :  { %v1197_v19 = vmul.f32 %v1182_v4, %v1182_v4  ;;  %v1149_v37 = vadd.f32 %v1148_v25, %v1102_v32 }
 0x153   :  { %v1201_v52 = vadd.f32 %v1197_v19, %v1193_v26 }
 0x155   :  { %v1204_v36 = vpack.c.bf16 %v1201_v52, %v1200_v2 }
 0x156   :  { %v1185_v40 = vpop.f32.mrf.mxu3 }
 0x157   :  { %v1186_v46 = vadd.f32 %v1185_v40, %v1149_v37  ;;  %1278 = vmatmul.bf16.vlgmr.msra.gmra.mxu0 %v1204_v36 }
 0x158   :  { %v1152_v3 = vpop.f32.mrf.mxu2 }
 0x159   :  { %v1198_v21 = vmul.f32 %v1186_v46, %v1186_v46  ;;  %v1153_v48 = vadd.f32 %v1152_v3, %v1108_v45 }
 0x15b   :  { %v1202_v33 = vadd.f32 %v1198_v21, %v1194_v11 }
 0x15e   :  { %v1189_v49 = vpop.f32.mrf.mxu3 }
 0x15f   :  { %v1190_v43 = vadd.f32 %v1189_v49, %v1153_v48 }
 0x161   :  { %v1199_v29 = vmul.f32 %v1190_v43, %v1190_v43 }
 0x163   :  { %v1203_v53 = vadd.f32 %v1199_v29, %v1195_v47 }
 0x165   :  { %v1205_v54 = vpack.c.bf16 %v1203_v53, %v1202_v33 }
 0x167   :  { %1283 = vmatmul.bf16.vlgmr.msra.gmra.mxu1 %v1205_v54 }
 0x1d4   :  { %v1279_v55 = vpop.f32.mrf.mxu0 }
 0x1d5   :  { %v1280_v57 = vadd.f32 1e-06, %v1279_v55 }
 0x1d7   :  { %1417 = vlog2.f32 %v1280_v57 }
 0x1dc   :  { %v1281_v63 = vpop.f32.mrf.mxu0 }
 0x1dd   :  { %v1282_v0 = vadd.f32 1e-06, %v1281_v63  ;;  %v1418_v1 = vpop.eup %1417 }
 0x1de   :  { %v1290_v7 = vmul.f32 0.6931472, %v1418_v1 }
 0x1df   :  { %1419 = vlog2.f32 %v1282_v0 }
 0x1e4   :  { %v1284_v38 = vpop.f32.mrf.mxu1 }
 0x1e5   :  { %v1420_v59 = vpop.eup %1419  ;;  %v1285_v9 = vadd.f32 1e-06, %v1284_v38 }
 0x1e6   :  { %v1292_v27 = vmul.f32 0.6931472, %v1420_v59 }
 0x1e7   :  { %1421 = vlog2.f32 %v1285_v9 }
 0x1e8   :  { %v1307_v51 = vmul.f32 %v1385_v6, %v1292_v27 }
 0x1ea   :  { %v1310_v56 = vadd.f32 %v1307_v51, %v1290_v7 }
 0x1ec   :  { %v1311_v30 = vrot.slane %v1310_v56, 4  ;;  %v1286_v14 = vpop.f32.mrf.mxu1 }
 0x1ed   :  { %v1287_v10 = vadd.f32 1e-06, %v1286_v14  ;;  %v1422_v50 = vpop.eup %1421 }
 0x1ee   :  { %v1312_v2 = vadd.f32 %v1311_v30, %v1310_v56  ;;  %v1294_v25 = vmul.f32 0.6931472, %v1422_v50 }
 0x1ef   :  { %1423 = vlog2.f32 %v1287_v10 }
 0x1f0   :  { %v1313_v13 = vrot.slane %v1312_v2, 2 }
 0x1f2   :  { %v1314_v22 = vadd.f32 %v1313_v13, %v1312_v2 }
 0x1f4   :  { %v1315_v12 = vrot.slane %v1314_v22, 1 }
 0x1f5   :  { %v1424_v17 = vpop.eup %1423 }
 0x1f6   :  { %v1316_v18 = vadd.f32 %v1315_v12, %v1314_v22  ;;  %v1296_v5 = vmul.f32 0.6931472, %v1424_v17 }
 0x1f8   :  { %v1324_v4 = vmul.f32 0.11111111, %v1316_v18  ;;  %v1309_v26 = vmul.f32 %v1385_v6, %v1296_v5 }
 0x1fa   :  { %v1326_v28 = vsub.f32 %v1290_v7, %v1324_v4  ;;  %v1327_v19 = vsub.f32 %v1292_v27, %v1324_v4  ;;  %v1317_v61 = vadd.f32 %v1309_v26, %v1294_v25 }
 0x1fc   :  { %1330 = vst [vmem:[#allocation5] sm:$0xff] %v1326_v28  ;;  %v1318_v20 = vrot.slane %v1317_v61, 4 }
 0x1fd   :  { %1331 = vst [vmem:[#allocation5 + $0x8] sm:$0xff] %v1327_v19 }
 0x1fe   :  { %v1319_v32 = vadd.f32 %v1318_v20, %v1317_v61 }
 0x200   :  { %v1320_v52 = vrot.slane %v1319_v32, 2 }
 0x202   :  { %v1321_v23 = vadd.f32 %v1320_v52, %v1319_v32 }
 0x204   :  { %v1322_v58 = vrot.slane %v1321_v23, 1 }
 0x206   :  { %v1323_v34 = vadd.f32 %v1322_v58, %v1321_v23 }
 0x208   :  { %v1325_v36 = vmul.f32 0.11111111, %v1323_v34 }
 0x20a   :  { %v1328_v37 = vsub.f32 %v1294_v25, %v1325_v36  ;;  %v1329_v39 = vsub.f32 %v1296_v5, %v1325_v36 }
 0x20c   :  { %1332 = vst [vmem:[#allocation5 + $0x10] sm:$0xff] %v1328_v37 }
 0x20d   :  { %1333 = vst [vmem:[#allocation5 + $0x18] sm:$0xff] %v1329_v39 }
 0x20e   :  { %1346 = dma.vmem_to_hbm [thread:$0]  %s1339_s21, 512, %s1341_s24, [#allocation4], %s1482_s25, %s1482_s25, %s1483_s26  }
 0x20f   :  { %1475 = dma.done.wait [#allocation4], 512  }
 0x210   :  { %1476 = vsyncadd [#allocation4], 4294966784 }
 0x211   :  { %1351 = vsyncpa [#allocation3], 1 }
 0x212   :  { %1352 = vsyncpa [#allocation4], 1 }

</bundles_post_ra>
